<compile_context>
chip_gen: v5e
topology: v5e:2x2
jax: 0.10.0
libtpu: 0.0.40
codegen_flags: <defaults>
</compile_context>

<pallas_src>
import functools
import math

import jax
import jax.numpy as jnp
from jax import lax
from jax.experimental import pallas as pl
from jax.experimental.pallas import tpu as pltpu


def _mha_kernel(x_ref, add_ref, wqkv_ref, bqkv_ref, wo_t_ref, bo_ref, *refs,
                num_heads, q_tile, with_weights, mm_dtype, scores_dtype, approx_recip):
    if with_weights:
        out_ref, attnw_ref, qkv_ref, o_acc = refs
    else:
        out_ref, qkv_ref, o_acc = refs
        attnw_ref = None

    S = x_ref.shape[1]
    E = x_ref.shape[2]
    H = num_heads
    Dh = E // H
    qi = pl.program_id(1)

    # Fused QKV projection for the whole sequence, once per batch item (first q-tile only).
    # One (S,E)x(E,3E) MXU matmul; 1/sqrt(Dh) already folded into the Q weights/bias.
    @pl.when(qi == 0)
    def _():
        xx = (x_ref[0] + add_ref[0]).astype(mm_dtype)
        qkv_ref[...] = (jnp.dot(xx, wqkv_ref[...], preferred_element_type=jnp.float32)
                        + bqkv_ref[...])

    q0 = pl.multiple_of(qi * q_tile, q_tile)
    inv_h = 1.0 / H

    # Per-head attention for this query tile. Heads are grouped so each store into the
    # (q_tile, E) VMEM scratch is >=128 lanes wide (avoids masked partial stores for Dh<128).
    heads_per_store = min(H, max(1, 128 // Dh))
    for g0 in range(0, H, heads_per_store):
        group = range(g0, min(H, g0 + heads_per_store))
        outs = []
        for h in group:
            lo = h * Dh
            q_h = qkv_ref[pl.ds(q0, q_tile), lo:lo + Dh].astype(scores_dtype)
            k_h = qkv_ref[:, E + lo:E + lo + Dh].astype(scores_dtype)
            v_h = qkv_ref[:, 2 * E + lo:2 * E + lo + Dh].astype(mm_dtype)
            # NT matmul (contract dim 1 of both operands): no explicit XLU transpose of K.
            s = lax.dot_general(q_h, k_h, (((1,), (1,)), ((), ())),
                                preferred_element_type=jnp.float32)        # (q_tile, S)
            m = jnp.max(s, axis=-1, keepdims=True)
            p = jnp.exp(s - m)
            denom = jnp.sum(p, axis=-1, keepdims=True)
            if with_weights:
                # Exact divide: returned attention weights need full accuracy. Accumulate the
                # head-mean straight into the output block (no extra (q_tile,S) scratch).
                p = p / denom
                if h == 0:
                    attnw_ref[0] = p * inv_h
                else:
                    attnw_ref[0] += p * inv_h
                o_h = jnp.dot(p.astype(mm_dtype), v_h, preferred_element_type=jnp.float32)
            else:
                # Serving path: normalize AFTER the PV matmul — one EUP reciprocal plus a
                # (q_tile,Dh) multiply instead of an (q_tile,S) divide per head.
                o_h = jnp.dot(p.astype(mm_dtype), v_h, preferred_element_type=jnp.float32)
                o_h = o_h * pl.reciprocal(denom, approx=approx_recip)
            outs.append(o_h)
        o_grp = outs[0] if len(outs) == 1 else jnp.concatenate(outs, axis=1)
        o_acc[:, g0 * Dh:(g0 + len(outs)) * Dh] = o_grp

    # Single full-contraction output projection: concat(head outputs) @ Wo^T.
    out = jnp.dot(o_acc[...].astype(mm_dtype), wo_t_ref[...],
                  preferred_element_type=jnp.float32) + bo_ref[...]
    out_ref[0] = out.astype(out_ref.dtype)


def time_aware_attention(x, time_step, params, num_heads, need_weights=True,
                         matmul_dtype=jnp.bfloat16, q_tile=None):
    B, S, E = x.shape
    H = num_heads
    Dh = E // H
    scale = 1.0 / math.sqrt(Dh)
    mm_dtype = jnp.dtype(matmul_dtype)
    f32 = jnp.dtype(jnp.float32)
    # Scores/softmax stay f32 whenever the attention map is returned (accuracy of the weights);
    # on the serving path they follow the matmul dtype.
    scores_dtype = f32 if (need_weights or mm_dtype == f32) else mm_dtype
    approx_recip = bool(mm_dtype != f32)

    # ---------- host-side glue (tiny; stays in XLA) ----------
    addend = params["rel_pos"][:, :S, :]                                   # (1, S, E)
    if time_step is not None:
        t = jnp.asarray([[time_step]], dtype=jnp.float32)                  # (1, 1)
        th = jax.nn.gelu(t @ params["t_w1"].T + params["t_b1"], approximate=False)
        time_enc = th @ params["t_w2"].T + params["t_b2"]                  # (1, E)
        addend = addend + time_enc[:, None, :]
    addend = addend.astype(jnp.float32)

    wq, wk, wv = jnp.split(params["in_proj_w"], 3, axis=0)                 # (E, E) each
    bq, bk, bv = jnp.split(params["in_proj_b"], 3, axis=0)                 # (E,) each
    # Pre-transpose, fold the 1/sqrt(Dh) scale into Q, fuse into one (E,3E) weight; cast to
    # the MXU operand dtype on the host (halves weight DMA/VMEM for bf16).
    wqkv_t = jnp.concatenate([wq.T * scale, wk.T, wv.T], axis=1).astype(mm_dtype)
    bqkv = jnp.concatenate([bq * scale, bk, bv]).reshape(1, 3 * E).astype(jnp.float32)
    wo_t = params["out_proj_w"].T.astype(mm_dtype)                         # (E, E)
    bo = params["out_proj_b"].reshape(1, E).astype(jnp.float32)            # (1, E)

    # ---------- query tiling (keeps the (S,S)/(tq,E) working set inside v7x's 64 MiB) ----------
    if q_tile is None:
        if S <= 512:
            q_tile = S
        else:
            q_tile = next((t for t in (512, 384, 256, 128) if S % t == 0), S)
    q_tile = min(int(q_tile), S)
    if S % q_tile != 0:
        q_tile = S   # TODO(synk): support ragged query tiles via masking.
    nq = S // q_tile

    # ---------- VMEM budget -> explicit vmem_limit_bytes ----------
    f32b, xb, mmb = 4, jnp.dtype(x.dtype).itemsize, mm_dtype.itemsize
    attnw_block_bytes = q_tile * S * f32b
    attnw_single = need_weights and attnw_block_bytes > (2 << 20)          # single-buffer big maps
    block_bytes = (
        2 * S * E * xb                         # x (double-buffered; re-DMAs only per batch item)
        + S * E * f32b                         # rel_pos + time_enc addend (single-buffered)
        + E * 3 * E * mmb + 3 * E * f32b       # fused Wqkv^T + bias (single-buffered)
        + E * E * mmb + E * f32b               # Wo^T + bias (single-buffered)
        + 2 * q_tile * E * xb                  # out (double-buffered)
    )
    if need_weights:
        block_bytes += attnw_block_bytes * (1 if attnw_single else 2)
    scratch_bytes = S * 3 * E * f32b + q_tile * E * f32b
    live_tmp = 4 * q_tile * S * f32b + 4 * q_tile * E * f32b               # scores/p + temporaries
    vmem_limit = int(min(128 << 20,
                         max(32 << 20, 1.5 * (block_bytes + scratch_bytes + live_tmp) + (8 << 20))))

    kernel = functools.partial(
        _mha_kernel, num_heads=H, q_tile=q_tile, with_weights=need_weights,
        mm_dtype=mm_dtype, scores_dtype=scores_dtype, approx_recip=approx_recip)

    # Constant-index blocks never re-DMA -> single buffer (don't waste VMEM double-buffering).
    def const_spec(shape):
        return pl.BlockSpec(shape, lambda b, qi: (0,) * len(shape),
                            pipeline_mode=pl.Buffered(1))

    in_specs = [
        pl.BlockSpec((1, S, E), lambda b, qi: (b, 0, 0)),                  # x (per batch item)
        const_spec((1, S, E)),                                             # rel_pos + time_enc
        const_spec((E, 3 * E)),                                            # fused Wqkv^T (Q scaled)
        const_spec((1, 3 * E)),                                            # fused b_qkv
        const_spec((E, E)),                                                # Wo^T
        const_spec((1, E)),                                                # bo
    ]

    out_spec = pl.BlockSpec((1, q_tile, E), lambda b, qi: (b, qi, 0))
    scratch = [pltpu.VMEM((S, 3 * E), jnp.float32),   # fused QKV, persists across q-tiles
               pltpu.VMEM((q_tile, E), jnp.float32)]  # concat'd head outputs for this q-tile
    if need_weights:
        attnw_kw = dict(pipeline_mode=pl.Buffered(1)) if attnw_single else {}
        out_specs = [out_spec,
                     pl.BlockSpec((1, q_tile, S), lambda b, qi: (b, qi, 0), **attnw_kw)]
        out_shape = (jax.ShapeDtypeStruct((B, S, E), x.dtype),
                     jax.ShapeDtypeStruct((B, S, S), jnp.float32))
    else:
        out_specs = out_spec
        out_shape = jax.ShapeDtypeStruct((B, S, E), x.dtype)

    grid_spec = pltpu.PrefetchScalarGridSpec(
        num_scalar_prefetch=0,
        grid=(B, nq),
        in_specs=in_specs,
        out_specs=out_specs,
        scratch_shapes=scratch,
    )

    # Q-tile axis is 'arbitrary' because the QKV scratch is carried across q-tiles of a batch item.
    # TODO(synk): when B == 1 on v7x one TensorCore idles; making the q-tile axis parallel would
    # require recomputing QKV per tile (or a separate QKV pre-pass).
    return pl.pallas_call(
        kernel,
        out_shape=out_shape,
        grid_spec=grid_spec,
        compiler_params=pltpu.CompilerParams(
            dimension_semantics=("parallel", "arbitrary"),
            vmem_limit_bytes=vmem_limit),
    )(x, addend, wqkv_t, bqkv, wo_t, bo)


def init_params(key, embed_size):
    """Deterministic synthetic parameters with the same shapes as the PyTorch module."""
    E = embed_size
    ks = jax.random.split(key, 5)
    return {
        "rel_pos":    jax.random.normal(ks[0], (1, 512, E), jnp.float32) * 0.02,
        "t_w1":       jax.random.normal(ks[1], (E // 2, 1), jnp.float32) * 0.1,
        "t_b1":       jnp.zeros((E // 2,), jnp.float32),
        "t_w2":       jax.random.normal(ks[2], (E, E // 2), jnp.float32) * 0.1,
        "t_b2":       jnp.zeros((E,), jnp.float32),
        "in_proj_w":  jax.random.normal(ks[3], (3 * E, E), jnp.float32) * (1.0 / math.sqrt(E)),
        "in_proj_b":  jnp.zeros((3 * E,), jnp.float32),
        "out_proj_w": jax.random.normal(ks[4], (E, E), jnp.float32) * (1.0 / math.sqrt(E)),
        "out_proj_b": jnp.zeros((E,), jnp.float32),
    }


def reference(x, time_step, params, num_heads):
    """Pure-JAX reference replicating torch nn.MultiheadAttention (eval mode) semantics."""
    B, S, E = x.shape
    H, Dh = num_heads, E // num_heads
    x = x + params["rel_pos"][:, :S, :]
    t = jnp.asarray([[time_step]], dtype=x.dtype)
    h = jax.nn.gelu(t @ params["t_w1"].T + params["t_b1"], approximate=False)
    te = h @ params["t_w2"].T + params["t_b2"]
    x = x + te[:, None, :]
    wq, wk, wv = jnp.split(params["in_proj_w"], 3, axis=0)
    bq, bk, bv = jnp.split(params["in_proj_b"], 3, axis=0)
    q = (x @ wq.T + bq).reshape(B, S, H, Dh).transpose(0, 2, 1, 3) / math.sqrt(Dh)
    k = (x @ wk.T + bk).reshape(B, S, H, Dh).transpose(0, 2, 1, 3)
    v = (x @ wv.T + bv).reshape(B, S, H, Dh).transpose(0, 2, 1, 3)
    p = jax.nn.softmax(jnp.einsum("bhqd,bhkd->bhqk", q, k), axis=-1)
    o = jnp.einsum("bhqk,bhkd->bhqd", p, v).transpose(0, 2, 1, 3).reshape(B, S, E)
    out = o @ params["out_proj_w"].T + params["out_proj_b"]
    return out, p.mean(axis=1)


if __name__ == "__main__":
    B, S, E, H = 2, 8, 32, 4
    key = jax.random.PRNGKey(0)
    kx, kp, kx2 = jax.random.split(key, 3)
    x = jax.random.normal(kx, (B, S, E), jnp.float32)
    params = init_params(kp, E)
    time_step = 0.5

    ref_out, ref_w = reference(x, time_step, params, H)

    # 1) Exact-parity path (f32 MXU operands) — tight tolerances.
    out_f32, w_f32 = time_aware_attention(x, time_step, params, H, matmul_dtype=jnp.float32)
    jax.block_until_ready((out_f32, w_f32))
    assert out_f32.shape == (B, S, E) and w_f32.shape == (B, S, S)
    assert jnp.allclose(out_f32, ref_out, atol=1e-4, rtol=1e-4)
    assert jnp.allclose(w_f32, ref_w, atol=1e-5, rtol=1e-4)

    # 2) Fast path (bf16 MXU operands, f32 accumulation, f32 softmax) — relaxed tolerance.
    out_bf16, w_bf16 = time_aware_attention(x, time_step, params, H)
    jax.block_until_ready((out_bf16, w_bf16))
    assert jnp.allclose(out_bf16, ref_out, atol=5e-2, rtol=5e-2)
    assert jnp.allclose(w_bf16, ref_w, atol=5e-2, rtol=5e-2)

    # 3) Serving path: no attention map (skips O(S^2) writeback + exact softmax divide).
    out_only = time_aware_attention(x, time_step, params, H, need_weights=False)
    jax.block_until_ready(out_only)
    assert jnp.allclose(out_only, ref_out, atol=5e-2, rtol=5e-2)

    # 4) Exercise the q-tile grid axis (persistent QKV scratch across q-tiles), f32 parity.
    S2 = 16
    x2 = jax.random.normal(kx2, (B, S2, E), jnp.float32)
    ref_out2, ref_w2 = reference(x2, time_step, params, H)
    out2, w2 = time_aware_attention(x2, time_step, params, H,
                                    matmul_dtype=jnp.float32, q_tile=8)
    jax.block_until_ready((out2, w2))
    assert jnp.allclose(out2, ref_out2, atol=1e-4, rtol=1e-4)
    assert jnp.allclose(w2, ref_w2, atol=1e-5, rtol=1e-4)

    print("KERNEL_OK")
</pallas_src>

<mosaic_0001>
module attributes {stable_mosaic.version = 11 : i64} {
  func.func @_mha_kernel(%arg0: i32, %arg1: i32, %arg2: memref<1x8x32xf32, #tpu.memory_space<vmem>>, %arg3: memref<1x8x32xf32, #tpu.memory_space<vmem>>, %arg4: memref<32x96xf32, #tpu.memory_space<vmem>>, %arg5: memref<1x96xf32, #tpu.memory_space<vmem>>, %arg6: memref<32x32xf32, #tpu.memory_space<vmem>>, %arg7: memref<1x32xf32, #tpu.memory_space<vmem>>, %arg8: memref<1x8x32xf32, #tpu.memory_space<vmem>>, %arg9: memref<1x8x8xf32, #tpu.memory_space<vmem>>, %arg10: memref<8x96xf32, #tpu.memory_space<vmem>>, %arg11: memref<8x32xf32, #tpu.memory_space<vmem>>) attributes {dimension_semantics = [#tpu.dimension_semantics<parallel>, #tpu.dimension_semantics<arbitrary>], iteration_bounds = array<i64: 2, 1>, scalar_prefetch = 0 : i64, scratch_operands = 2 : i64, tpu.core_type = #tpu.core_type<tc>, window_params = [{transform_indices = @transform_0, window_bounds = array<i64: 1, 8, 32>}, {pipeline_mode = #tpu.pipeline_mode<synchronous>, transform_indices = @transform_1, window_bounds = array<i64: 1, 8, 32>}, {pipeline_mode = #tpu.pipeline_mode<synchronous>, transform_indices = @transform_2, window_bounds = array<i64: 32, 96>}, {pipeline_mode = #tpu.pipeline_mode<synchronous>, transform_indices = @transform_3, window_bounds = array<i64: 1, 96>}, {pipeline_mode = #tpu.pipeline_mode<synchronous>, transform_indices = @transform_4, window_bounds = array<i64: 32, 32>}, {pipeline_mode = #tpu.pipeline_mode<synchronous>, transform_indices = @transform_5, window_bounds = array<i64: 1, 32>}, {transform_indices = @transform_6, window_bounds = array<i64: 1, 8, 32>}, {transform_indices = @transform_7, window_bounds = array<i64: 1, 8, 8>}]} {
    %c0_i32 = arith.constant 0 : i32
    %0 = arith.cmpi eq, %arg1, %c0_i32 : i32
    %1 = arith.extui %0 : i1 to i32
    %c0_i32_0 = arith.constant 0 : i32
    %2 = arith.cmpi ne, %1, %c0_i32_0 : i32
    scf.if %2 {
      %c0_61 = arith.constant 0 : index
      %c0_62 = arith.constant 0 : index
      %c0_63 = arith.constant 0 : index
      %105 = vector.load %arg2[%c0_61, %c0_62, %c0_63] : memref<1x8x32xf32, #tpu.memory_space<vmem>>, vector<1x8x32xf32>
      %106 = vector.shape_cast %105 : vector<1x8x32xf32> to vector<8x32xf32>
      %c0_64 = arith.constant 0 : index
      %c0_65 = arith.constant 0 : index
      %c0_66 = arith.constant 0 : index
      %107 = vector.load %arg3[%c0_64, %c0_65, %c0_66] : memref<1x8x32xf32, #tpu.memory_space<vmem>>, vector<1x8x32xf32>
      %108 = vector.shape_cast %107 : vector<1x8x32xf32> to vector<8x32xf32>
      %109 = arith.addf %106, %108 : vector<8x32xf32>
      %c0_67 = arith.constant 0 : index
      %c0_68 = arith.constant 0 : index
      %110 = vector.load %arg4[%c0_67, %c0_68] : memref<32x96xf32, #tpu.memory_space<vmem>>, vector<32x96xf32>
      %cst_69 = arith.constant dense<0.000000e+00> : vector<8x96xf32>
      %111 = tpu.matmul %109, %110, %cst_69 {dimension_numbers = #tpu.dot_dimension_numbers<[1], [0], [0], [1], [0, 0, 1, 1], [], []>} : vector<8x32xf32>, vector<32x96xf32>, vector<8x96xf32> -> vector<8x96xf32>
      %c0_70 = arith.constant 0 : index
      %c0_71 = arith.constant 0 : index
      %112 = vector.load %arg5[%c0_70, %c0_71] : memref<1x96xf32, #tpu.memory_space<vmem>>, vector<1x96xf32>
      %113 = vector.broadcast %112 : vector<1x96xf32> to vector<8x96xf32>
      %114 = arith.addf %111, %113 : vector<8x96xf32>
      %c0_72 = arith.constant 0 : index
      %c0_73 = arith.constant 0 : index
      %115 = vector.load %arg10[%c0_72, %c0_73] : memref<8x96xf32, #tpu.memory_space<vmem>>, vector<8x96xf32>
      tpu.vector_store %arg10[%c0_72, %c0_73], %114 {strides = array<i32>} : memref<8x96xf32, #tpu.memory_space<vmem>>, vector<8x96xf32>,
    } else {
    }
    %c8_i32 = arith.constant 8 : i32
    %3 = arith.muli %arg1, %c8_i32 : i32
    %4 = tpu.assume_multiple %3, 8 : i32
    %5 = arith.index_cast %4 : i32 to index
    %c0 = arith.constant 0 : index
    %6 = vector.load %arg10[%5, %c0] : memref<8x96xf32, #tpu.memory_space<vmem>>, vector<8x8xf32>
    %c0_1 = arith.constant 0 : index
    %c32 = arith.constant 32 : index
    %7 = vector.load %arg10[%c0_1, %c32] : memref<8x96xf32, #tpu.memory_space<vmem>>, vector<8x8xf32>
    %c0_2 = arith.constant 0 : index
    %c64 = arith.constant 64 : index
    %8 = vector.load %arg10[%c0_2, %c64] : memref<8x96xf32, #tpu.memory_space<vmem>>, vector<8x8xf32>
    %cst = arith.constant dense<0.000000e+00> : vector<8x8xf32>
    %9 = tpu.matmul %6, %7, %cst {dimension_numbers = #tpu.dot_dimension_numbers<[1], [1], [0], [0], [0, 0, 1, 0], [], []>} : vector<8x8xf32>, vector<8x8xf32>, vector<8x8xf32> -> vector<8x8xf32>
    %cst_3 = arith.constant dense<0xFF800000> : vector<8xf32>
    %10 = vector.multi_reduction <maximumf>, %9, %cst_3 [1] : vector<8x8xf32> to vector<8xf32>
    %11 = vector.shape_cast %10 : vector<8xf32> to vector<8x1xf32>
    %12 = vector.broadcast %11 : vector<8x1xf32> to vector<8x8xf32>
    %13 = arith.subf %9, %12 : vector<8x8xf32>
    %14 = math.exp %13 : vector<8x8xf32>
    %cst_4 = arith.constant dense<0.000000e+00> : vector<8xf32>
    %15 = vector.multi_reduction <add>, %14, %cst_4 [1] : vector<8x8xf32> to vector<8xf32>
    %16 = vector.shape_cast %15 : vector<8xf32> to vector<8x1xf32>
    %17 = vector.broadcast %16 : vector<8x1xf32> to vector<8x8xf32>
    %18 = arith.divf %14, %17 : vector<8x8xf32>
    %cst_5 = arith.constant 2.500000e-01 : f32
    %19 = vector.broadcast %cst_5 : f32 to vector<8x8xf32>
    %20 = arith.mulf %18, %19 : vector<8x8xf32>
    %c0_6 = arith.constant 0 : index
    %c0_7 = arith.constant 0 : index
    %c0_8 = arith.constant 0 : index
    %21 = vector.load %arg9[%c0_6, %c0_7, %c0_8] : memref<1x8x8xf32, #tpu.memory_space<vmem>>, vector<1x8x8xf32>
    %22 = vector.shape_cast %21 : vector<1x8x8xf32> to vector<8x8xf32>
    %23 = vector.shape_cast %20 : vector<8x8xf32> to vector<1x8x8xf32>
    tpu.vector_store %arg9[%c0_6, %c0_7, %c0_8], %23 {strides = array<i32>} : memref<1x8x8xf32, #tpu.memory_space<vmem>>, vector<1x8x8xf32>,
    %cst_9 = arith.constant dense<0.000000e+00> : vector<8x8xf32>
    %24 = tpu.matmul %18, %8, %cst_9 {dimension_numbers = #tpu.dot_dimension_numbers<[1], [0], [0], [1], [0, 0, 1, 1], [], []>} : vector<8x8xf32>, vector<8x8xf32>, vector<8x8xf32> -> vector<8x8xf32>
    %25 = arith.index_cast %4 : i32 to index
    %c8 = arith.constant 8 : index
    %26 = vector.load %arg10[%25, %c8] : memref<8x96xf32, #tpu.memory_space<vmem>>, vector<8x8xf32>
    %c0_10 = arith.constant 0 : index
    %c40 = arith.constant 40 : index
    %27 = vector.load %arg10[%c0_10, %c40] : memref<8x96xf32, #tpu.memory_space<vmem>>, vector<8x8xf32>
    %c0_11 = arith.constant 0 : index
    %c72 = arith.constant 72 : index
    %28 = vector.load %arg10[%c0_11, %c72] : memref<8x96xf32, #tpu.memory_space<vmem>>, vector<8x8xf32>
    %cst_12 = arith.constant dense<0.000000e+00> : vector<8x8xf32>
    %29 = tpu.matmul %26, %27, %cst_12 {dimension_numbers = #tpu.dot_dimension_numbers<[1], [1], [0], [0], [0, 0, 1, 0], [], []>} : vector<8x8xf32>, vector<8x8xf32>, vector<8x8xf32> -> vector<8x8xf32>
    %cst_13 = arith.constant dense<0xFF800000> : vector<8xf32>
    %30 = vector.multi_reduction <maximumf>, %29, %cst_13 [1] : vector<8x8xf32> to vector<8xf32>
    %31 = vector.shape_cast %30 : vector<8xf32> to vector<8x1xf32>
    %32 = vector.broadcast %31 : vector<8x1xf32> to vector<8x8xf32>
    %33 = arith.subf %29, %32 : vector<8x8xf32>
    %34 = math.exp %33 : vector<8x8xf32>
    %cst_14 = arith.constant dense<0.000000e+00> : vector<8xf32>
    %35 = vector.multi_reduction <add>, %34, %cst_14 [1] : vector<8x8xf32> to vector<8xf32>
    %36 = vector.shape_cast %35 : vector<8xf32> to vector<8x1xf32>
    %37 = vector.broadcast %36 : vector<8x1xf32> to vector<8x8xf32>
    %38 = arith.divf %34, %37 : vector<8x8xf32>
    %c0_15 = arith.constant 0 : index
    %c0_16 = arith.constant 0 : index
    %c0_17 = arith.constant 0 : index
    %39 = vector.load %arg9[%c0_15, %c0_16, %c0_17] : memref<1x8x8xf32, #tpu.memory_space<vmem>>, vector<1x8x8xf32>
    %40 = vector.shape_cast %39 : vector<1x8x8xf32> to vector<8x8xf32>
    %cst_18 = arith.constant 2.500000e-01 : f32
    %41 = vector.broadcast %cst_18 : f32 to vector<8x8xf32>
    %42 = arith.mulf %38, %41 : vector<8x8xf32>
    %43 = arith.addf %40, %42 : vector<8x8xf32>
    %c0_19 = arith.constant 0 : index
    %c0_20 = arith.constant 0 : index
    %c0_21 = arith.constant 0 : index
    %44 = vector.load %arg9[%c0_19, %c0_20, %c0_21] : memref<1x8x8xf32, #tpu.memory_space<vmem>>, vector<1x8x8xf32>
    %45 = vector.shape_cast %44 : vector<1x8x8xf32> to vector<8x8xf32>
    %46 = vector.shape_cast %43 : vector<8x8xf32> to vector<1x8x8xf32>
    tpu.vector_store %arg9[%c0_19, %c0_20, %c0_21], %46 {strides = array<i32>} : memref<1x8x8xf32, #tpu.memory_space<vmem>>, vector<1x8x8xf32>,
    %cst_22 = arith.constant dense<0.000000e+00> : vector<8x8xf32>
    %47 = tpu.matmul %38, %28, %cst_22 {dimension_numbers = #tpu.dot_dimension_numbers<[1], [0], [0], [1], [0, 0, 1, 1], [], []>} : vector<8x8xf32>, vector<8x8xf32>, vector<8x8xf32> -> vector<8x8xf32>
    %48 = arith.index_cast %4 : i32 to index
    %c16 = arith.constant 16 : index
    %49 = vector.load %arg10[%48, %c16] : memref<8x96xf32, #tpu.memory_space<vmem>>, vector<8x8xf32>
    %c0_23 = arith.constant 0 : index
    %c48 = arith.constant 48 : index
    %50 = vector.load %arg10[%c0_23, %c48] : memref<8x96xf32, #tpu.memory_space<vmem>>, vector<8x8xf32>
    %c0_24 = arith.constant 0 : index
    %c80 = arith.constant 80 : index
    %51 = vector.load %arg10[%c0_24, %c80] : memref<8x96xf32, #tpu.memory_space<vmem>>, vector<8x8xf32>
    %cst_25 = arith.constant dense<0.000000e+00> : vector<8x8xf32>
    %52 = tpu.matmul %49, %50, %cst_25 {dimension_numbers = #tpu.dot_dimension_numbers<[1], [1], [0], [0], [0, 0, 1, 0], [], []>} : vector<8x8xf32>, vector<8x8xf32>, vector<8x8xf32> -> vector<8x8xf32>
    %cst_26 = arith.constant dense<0xFF800000> : vector<8xf32>
    %53 = vector.multi_reduction <maximumf>, %52, %cst_26 [1] : vector<8x8xf32> to vector<8xf32>
    %54 = vector.shape_cast %53 : vector<8xf32> to vector<8x1xf32>
    %55 = vector.broadcast %54 : vector<8x1xf32> to vector<8x8xf32>
    %56 = arith.subf %52, %55 : vector<8x8xf32>
    %57 = math.exp %56 : vector<8x8xf32>
    %cst_27 = arith.constant dense<0.000000e+00> : vector<8xf32>
    %58 = vector.multi_reduction <add>, %57, %cst_27 [1] : vector<8x8xf32> to vector<8xf32>
    %59 = vector.shape_cast %58 : vector<8xf32> to vector<8x1xf32>
    %60 = vector.broadcast %59 : vector<8x1xf32> to vector<8x8xf32>
    %61 = arith.divf %57, %60 : vector<8x8xf32>
    %c0_28 = arith.constant 0 : index
    %c0_29 = arith.constant 0 : index
    %c0_30 = arith.constant 0 : index
    %62 = vector.load %arg9[%c0_28, %c0_29, %c0_30] : memref<1x8x8xf32, #tpu.memory_space<vmem>>, vector<1x8x8xf32>
    %63 = vector.shape_cast %62 : vector<1x8x8xf32> to vector<8x8xf32>
    %cst_31 = arith.constant 2.500000e-01 : f32
    %64 = vector.broadcast %cst_31 : f32 to vector<8x8xf32>
    %65 = arith.mulf %61, %64 : vector<8x8xf32>
    %66 = arith.addf %63, %65 : vector<8x8xf32>
    %c0_32 = arith.constant 0 : index
    %c0_33 = arith.constant 0 : index
    %c0_34 = arith.constant 0 : index
    %67 = vector.load %arg9[%c0_32, %c0_33, %c0_34] : memref<1x8x8xf32, #tpu.memory_space<vmem>>, vector<1x8x8xf32>
    %68 = vector.shape_cast %67 : vector<1x8x8xf32> to vector<8x8xf32>
    %69 = vector.shape_cast %66 : vector<8x8xf32> to vector<1x8x8xf32>
    tpu.vector_store %arg9[%c0_32, %c0_33, %c0_34], %69 {strides = array<i32>} : memref<1x8x8xf32, #tpu.memory_space<vmem>>, vector<1x8x8xf32>,
    %cst_35 = arith.constant dense<0.000000e+00> : vector<8x8xf32>
    %70 = tpu.matmul %61, %51, %cst_35 {dimension_numbers = #tpu.dot_dimension_numbers<[1], [0], [0], [1], [0, 0, 1, 1], [], []>} : vector<8x8xf32>, vector<8x8xf32>, vector<8x8xf32> -> vector<8x8xf32>
    %71 = arith.index_cast %4 : i32 to index
    %c24 = arith.constant 24 : index
    %72 = vector.load %arg10[%71, %c24] : memref<8x96xf32, #tpu.memory_space<vmem>>, vector<8x8xf32>
    %c0_36 = arith.constant 0 : index
    %c56 = arith.constant 56 : index
    %73 = vector.load %arg10[%c0_36, %c56] : memref<8x96xf32, #tpu.memory_space<vmem>>, vector<8x8xf32>
    %c0_37 = arith.constant 0 : index
    %c88 = arith.constant 88 : index
    %74 = vector.load %arg10[%c0_37, %c88] : memref<8x96xf32, #tpu.memory_space<vmem>>, vector<8x8xf32>
    %cst_38 = arith.constant dense<0.000000e+00> : vector<8x8xf32>
    %75 = tpu.matmul %72, %73, %cst_38 {dimension_numbers = #tpu.dot_dimension_numbers<[1], [1], [0], [0], [0, 0, 1, 0], [], []>} : vector<8x8xf32>, vector<8x8xf32>, vector<8x8xf32> -> vector<8x8xf32>
    %cst_39 = arith.constant dense<0xFF800000> : vector<8xf32>
    %76 = vector.multi_reduction <maximumf>, %75, %cst_39 [1] : vector<8x8xf32> to vector<8xf32>
    %77 = vector.shape_cast %76 : vector<8xf32> to vector<8x1xf32>
    %78 = vector.broadcast %77 : vector<8x1xf32> to vector<8x8xf32>
    %79 = arith.subf %75, %78 : vector<8x8xf32>
    %80 = math.exp %79 : vector<8x8xf32>
    %cst_40 = arith.constant dense<0.000000e+00> : vector<8xf32>
    %81 = vector.multi_reduction <add>, %80, %cst_40 [1] : vector<8x8xf32> to vector<8xf32>
    %82 = vector.shape_cast %81 : vector<8xf32> to vector<8x1xf32>
    %83 = vector.broadcast %82 : vector<8x1xf32> to vector<8x8xf32>
    %84 = arith.divf %80, %83 : vector<8x8xf32>
    %c0_41 = arith.constant 0 : index
    %c0_42 = arith.constant 0 : index
    %c0_43 = arith.constant 0 : index
    %85 = vector.load %arg9[%c0_41, %c0_42, %c0_43] : memref<1x8x8xf32, #tpu.memory_space<vmem>>, vector<1x8x8xf32>
    %86 = vector.shape_cast %85 : vector<1x8x8xf32> to vector<8x8xf32>
    %cst_44 = arith.constant 2.500000e-01 : f32
    %87 = vector.broadcast %cst_44 : f32 to vector<8x8xf32>
    %88 = arith.mulf %84, %87 : vector<8x8xf32>
    %89 = arith.addf %86, %88 : vector<8x8xf32>
    %c0_45 = arith.constant 0 : index
    %c0_46 = arith.constant 0 : index
    %c0_47 = arith.constant 0 : index
    %90 = vector.load %arg9[%c0_45, %c0_46, %c0_47] : memref<1x8x8xf32, #tpu.memory_space<vmem>>, vector<1x8x8xf32>
    %91 = vector.shape_cast %90 : vector<1x8x8xf32> to vector<8x8xf32>
    %92 = vector.shape_cast %89 : vector<8x8xf32> to vector<1x8x8xf32>
    tpu.vector_store %arg9[%c0_45, %c0_46, %c0_47], %92 {strides = array<i32>} : memref<1x8x8xf32, #tpu.memory_space<vmem>>, vector<1x8x8xf32>,
    %cst_48 = arith.constant dense<0.000000e+00> : vector<8x8xf32>
    %93 = tpu.matmul %84, %74, %cst_48 {dimension_numbers = #tpu.dot_dimension_numbers<[1], [0], [0], [1], [0, 0, 1, 1], [], []>} : vector<8x8xf32>, vector<8x8xf32>, vector<8x8xf32> -> vector<8x8xf32>
    %94 = tpu.concatenate %24, %47, %70, %93 in 1 : vector<8x8xf32>, vector<8x8xf32>, vector<8x8xf32>, vector<8x8xf32> -> vector<8x32xf32>
    %c0_49 = arith.constant 0 : index
    %c0_50 = arith.constant 0 : index
    %95 = vector.load %arg11[%c0_49, %c0_50] : memref<8x32xf32, #tpu.memory_space<vmem>>, vector<8x32xf32>
    tpu.vector_store %arg11[%c0_49, %c0_50], %94 {strides = array<i32>} : memref<8x32xf32, #tpu.memory_space<vmem>>, vector<8x32xf32>,
    %c0_51 = arith.constant 0 : index
    %c0_52 = arith.constant 0 : index
    %96 = vector.load %arg11[%c0_51, %c0_52] : memref<8x32xf32, #tpu.memory_space<vmem>>, vector<8x32xf32>
    %c0_53 = arith.constant 0 : index
    %c0_54 = arith.constant 0 : index
    %97 = vector.load %arg6[%c0_53, %c0_54] : memref<32x32xf32, #tpu.memory_space<vmem>>, vector<32x32xf32>
    %cst_55 = arith.constant dense<0.000000e+00> : vector<8x32xf32>
    %98 = tpu.matmul %96, %97, %cst_55 {dimension_numbers = #tpu.dot_dimension_numbers<[1], [0], [0], [1], [0, 0, 1, 1], [], []>} : vector<8x32xf32>, vector<32x32xf32>, vector<8x32xf32> -> vector<8x32xf32>
    %c0_56 = arith.constant 0 : index
    %c0_57 = arith.constant 0 : index
    %99 = vector.load %arg7[%c0_56, %c0_57] : memref<1x32xf32, #tpu.memory_space<vmem>>, vector<1x32xf32>
    %100 = vector.broadcast %99 : vector<1x32xf32> to vector<8x32xf32>
    %101 = arith.addf %98, %100 : vector<8x32xf32>
    %c0_58 = arith.constant 0 : index
    %c0_59 = arith.constant 0 : index
    %c0_60 = arith.constant 0 : index
    %102 = vector.load %arg8[%c0_58, %c0_59, %c0_60] : memref<1x8x32xf32, #tpu.memory_space<vmem>>, vector<1x8x32xf32>
    %103 = vector.shape_cast %102 : vector<1x8x32xf32> to vector<8x32xf32>
    %104 = vector.shape_cast %101 : vector<8x32xf32> to vector<1x8x32xf32>
    tpu.vector_store %arg8[%c0_58, %c0_59, %c0_60], %104 {strides = array<i32>} : memref<1x8x32xf32, #tpu.memory_space<vmem>>, vector<1x8x32xf32>,
    return
  }
  func.func @transform_0(%arg0: i32, %arg1: i32) -> (i32, i32, i32) {
    %c0_i32 = arith.constant 0 : i32
    %c0_i32_0 = arith.constant 0 : i32
    %c0_i32_1 = arith.constant 0 : i32
    return %arg0, %c0_i32, %c0_i32_0 : i32, i32, i32
  }
  func.func @transform_1(%arg0: i32, %arg1: i32) -> (i32, i32, i32) {
    %c0_i32 = arith.constant 0 : i32
    %c0_i32_0 = arith.constant 0 : i32
    %c0_i32_1 = arith.constant 0 : i32
    %c0_i32_2 = arith.constant 0 : i32
    return %c0_i32, %c0_i32_0, %c0_i32_1 : i32, i32, i32
  }
  func.func @transform_2(%arg0: i32, %arg1: i32) -> (i32, i32) {
    %c0_i32 = arith.constant 0 : i32
    %c0_i32_0 = arith.constant 0 : i32
    %c0_i32_1 = arith.constant 0 : i32
    return %c0_i32, %c0_i32_0 : i32, i32
  }
  func.func @transform_3(%arg0: i32, %arg1: i32) -> (i32, i32) {
    %c0_i32 = arith.constant 0 : i32
    %c0_i32_0 = arith.constant 0 : i32
    %c0_i32_1 = arith.constant 0 : i32
    return %c0_i32, %c0_i32_0 : i32, i32
  }
  func.func @transform_4(%arg0: i32, %arg1: i32) -> (i32, i32) {
    %c0_i32 = arith.constant 0 : i32
    %c0_i32_0 = arith.constant 0 : i32
    %c0_i32_1 = arith.constant 0 : i32
    return %c0_i32, %c0_i32_0 : i32, i32
  }
  func.func @transform_5(%arg0: i32, %arg1: i32) -> (i32, i32) {
    %c0_i32 = arith.constant 0 : i32
    %c0_i32_0 = arith.constant 0 : i32
    %c0_i32_1 = arith.constant 0 : i32
    return %c0_i32, %c0_i32_0 : i32, i32
  }
  func.func @transform_6(%arg0: i32, %arg1: i32) -> (i32, i32, i32) {
    %c0_i32 = arith.constant 0 : i32
    %c0_i32_0 = arith.constant 0 : i32
    return %arg0, %arg1, %c0_i32 : i32, i32, i32
  }
  func.func @transform_7(%arg0: i32, %arg1: i32) -> (i32, i32, i32) {
    %c0_i32 = arith.constant 0 : i32
    %c0_i32_0 = arith.constant 0 : i32
    return %arg0, %arg1, %c0_i32 : i32, i32, i32
  }
}

</mosaic_0001>

<bundles_post_ra>
// kernel: tpu_custom_call.1
= control target key start
LH: loop header
LB: loop body
LE: loop exit
PB: predicated region body
PF: predicated region fallthrough
CT: control target
= control target key end

     0   :  { %s1740_s0 = inlined_call_operand.hbm [shape: f32[2,8,32], index: 0, kind: input, shape index: {}]   ;;  %s1741_s1 = inlined_call_operand.hbm [shape: f32[1,8,32], index: 1, kind: input, shape index: {}]   ;;  %s1742_s2 = inlined_call_operand.hbm [shape: f32[32,96], index: 2, kind: input, shape index: {}]   ;;  %s1743_s3 = inlined_call_operand.vmem [shape: f32[1,96], index: 3, kind: input, shape index: {}]   ;;  %s1744_s4 = inlined_call_operand.hbm [shape: f32[32,32], index: 4, kind: input, shape index: {}]   ;;  %s1745_s5 = inlined_call_operand.vmem [shape: f32[1,32], index: 5, kind: input, shape index: {}]   ;;  %s1746_s6 = inlined_call_operand.hbm [shape: f32[2,8,32], index: 6, kind: output, shape index: {0}]   ;;  %s1747_s7 = inlined_call_operand.hbm [shape: f32[2,8,8], index: 7, kind: output, shape index: {1}]  }
   0x1   :  { %1748 = sst [smem:[#allocation20_spill]] %s1741_s1 }
   0x2   :  { %1749 = sst [smem:[#allocation21_spill]] %s1742_s2 }
   0x3   :  { %1750 = sst [smem:[#allocation22_spill]] %s1744_s4 }
   0x4   :  { %13 = vsyncpa [#allocation5], 0 }
   0x5   :  { %15 = vsyncpa [#allocation5 + $0x1], 0 }
   0x6   :  { %16 = vsyncpa [#allocation8], 0 }
   0x7   :  { %17 = vsyncpa [#allocation11], 0 }
   0x8   :  { %18 = vsyncpa [#allocation6], 0 }
   0x9   :  { %20 = vsyncpa [#allocation6 + $0x1], 0 }
   0xa   :  { %21 = vsyncpa [#allocation14], 0 }
   0xb   :  { %23 = vsyncpa [#allocation14 + $0x1], 0  ;;  %s1459_s24 = smov 0   ;;  %s1461_s25 = smov 0  }
   0xc   :  { %s1463_s26 = smov 0   ;;  %s1465_s27 = smov 0  }
   0xd   :  { %s1467_s28 = smov 0   ;;  %s1469_s29 = smov 0  }
   0xe LB: > { %s988_s30 = sadd.s32 4294967295, %s1398_s29   ;;  %s989_s8 = sadd.s32 4294967294, %s1398_s29   ;;  %s1398_s29 = sphi %s1469_s29, %s29_s29   ;;  %s1394_s28 = sphi %s1467_s28, %s1768_s28   ;;  %s1390_s27 = sphi %s1465_s27, %s1767_s27   ;;  %s1386_s26 = sphi %s1463_s26, %s1766_s26   ;;  %s1382_s25 = sphi %s1461_s25, %s1765_s25   ;;  %s1378_s24 = sphi %s1459_s24, %s1764_s24  }
   0xf   : > { %p61_p0 = scmp.ne.s32.totalorder %s1382_s25, %s1378_s24  ;;  %p1493_p1 = scmp.eq.s32.totalorder %s988_s30, 0 }
  0x10   : > { %p1497_p2 = scmp.eq.s32.totalorder %s988_s30, 1  ;;  %p198_p3 = scmp.eq.s32.totalorder %s989_s8, 1 }
  0x11   : > { %p1503_p4 = por %p1493_p1, %p61_p0  ;;  %p990_p5 = scmp.ge.s32.totalorder %s1398_s29, 1 }
  0x12   : > { %p1508_p6 = por %p198_p3, %p61_p0  ;;  %p233_p7 = scmp.lt.s32.totalorder %s1398_s29, 3 }
  0x13   : > { %s1755_s1 = sld [smem:[#allocation20_spill]]  ;;  %p994_p9 = scmp.ge.s32.totalorder %s1398_s29, 2 }
  0x14   : > { %p1516_p8 = pnand %p990_p5, %p233_p7  ;;  %s1400_s17 = smov [#allocation7]  }
  0x15   : > { %s247_s18 = sshll.u32 %s1400_s17, 4  ;;  %s1757_s2 = sld [smem:[#allocation21_spill]]  ;;  %s248_s18 = int_to_ptr.vmem [resolvable:$true] %s247_s18 }
  0x16   : > { %p1042_p10 = pneg %p1516_p8  ;;  %s1401_s23 = smov [#allocation9]  }
  0x17   : > { %s258_s30 = sshll.u32 %s1401_s23, 4  ;;  %s1402_s8 = smov 128   ;;  %s259_s30 = int_to_ptr.vmem [resolvable:$true] %s258_s30 }
  0x18   : > { %p1528_p11 = pnand %p1042_p10, %p1493_p1  ;;  %s1403_s13 = smov 8  }
  0x19   : > { %s245_s15 = sshll.u32 %s1755_s1, 4  ;;  %s1759_s4 = sld [smem:[#allocation22_spill]]  ;;  %s246_s15 = int_to_ptr.hbm [resolvable:$true] %s245_s15 }
  0x1a   : > { %1045 = dma.hbm_to_vmem [thread:$0]  (!%p1528_p11), %s246_s15, 128, %s248_s18, [#allocation8]  }
  0x1b   : > { %s256_s21 = sshll.u32 %s1757_s2, 4  ;;  %s1404_s20 = smov [#allocation10]   ;;  %s257_s21 = int_to_ptr.hbm [resolvable:$true] %s256_s21 }
  0x1c   : > { %1048 = dma.hbm_to_vmem [thread:$0]  (!%p1528_p11), %s257_s21, 512, %s259_s30, [#allocation8], %s1402_s8, %s1402_s8, %s1403_s13  }
  0x1d   : > { %s275_s1 = sshll.u32 %s1404_s20, 4  ;;  %s48_s15 = sadd.s32 1, %s1386_s26  ;;  %s276_s1 = int_to_ptr.vmem [resolvable:$true] %s275_s1 }
  0x1e   : > { %s41_s18 = sadd.s32 1, %s1394_s28  ;;  %p55_p12 = scmp.ne.s32.totalorder %s1386_s26, %s1382_s25 }
  0x1f   : > { %s273_s19 = sshll.u32 %s1759_s4, 4  ;;  %p43_p13 = scmp.ge.s32.totalorder %s41_s18, 2  ;;  %s274_s19 = int_to_ptr.hbm [resolvable:$true] %s273_s19 }
  0x20   : > { %1051 = dma.hbm_to_vmem [thread:$0]  (!%p1528_p11), %s274_s19, 512, %s276_s1, [#allocation11], %s1402_s8, %s1402_s8, %s1403_s13  }
  0x21   : > { %p56_p0 = scmp.eq.s32.totalorder %s1398_s29, 0  ;;  %p1548_p3 = por %p1497_p2, %p55_p12 }
  0x22   : > { %p1066_p5 = scmp.lt.s32.totalorder %s1398_s29, 2  ;;  %s1770_s18 = smov (%p43_p13, %s41_s18), 0 }
  0x23   : > { %p1555_p7 = por %p56_p0, %p55_p12  ;;  %s292_s1 = sand.u32 1, %s1386_s26  }
  0x24   : > { %s45_s22 = ssub.s32 %s1394_s28, %s1770_s18  ;;  %s995_s30 = sshll.u32 %s292_s1, 3 }
  0x25   : > { %p46_p10 = scmp.eq.s32.totalorder %s45_s22, 0  ;;  %s996_s8 = sshll.u32 %s1394_s28, 3 }
  0x26   : > { %s300_s17 = scalar_lea.hbm %s1740_s0, %s996_s8  ;;  %s296_s19 = scalar_lea.vmem [#allocation4], %s995_s30 }
  0x27   : > { %s1564_s10 = scalar_select %p46_p10, %s1386_s26, %s48_s15  }
  0x28   : > { %s304_s20 = sshll.u32 %s296_s19, 4  ;;  %s302_s2 = sshll.u32 %s300_s17, 4  ;;  %s305_s20 = int_to_ptr.vmem [resolvable:$true] %s304_s20  ;;  %s303_s2 = int_to_ptr.hbm [resolvable:$true] %s302_s2 }
  0x29   : > { %p1053_p2 = pnand %p1066_p5, %p1555_p7  ;;  %s293_s4 = scalar_lea.sflag [#allocation5], %s292_s1 }
  0x2a   : > { %313 = sbr.rel (%p1516_p8) target bundleno = 1121 (0x461), region = 44  ;;  %s1576_s15 = sand.u32 (!%p1516_p8), 1, %s1382_s25  }
  0x2b   : > { %1055 = dma.hbm_to_vmem [thread:$0]  (!%p1053_p2), %s303_s2, 128, %s305_s20, %s293_s4  }
  0x2c   : > { %s1579_s22 = sshll.u32 (!%p1516_p8), %s1576_s15, 3  ;;  %s316_s30 = scalar_lea.sflag (!%p1516_p8), [#allocation5], %s1576_s15 }
  0x2d   : > { %s319_s8 = scalar_lea.vmem (!%p1516_p8), [#allocation4], %s1579_s22 }
  0x2f   : > { %1357 = dma.done.wait (%p1503_p4), %s316_s30, 128  }
  0x30   : > { %1359 = vsyncadd (%p1503_p4), %s316_s30, 4294967168 }
  0x31   : > { %1361 = dma.done.wait (%p1493_p1), [#allocation8], 640  }
  0x32   : > { %1363 = vsyncadd (%p1493_p1), [#allocation8], 4294966656 }
  0x33   : > { %1365 = dma.done.wait (%p1493_p1), [#allocation11], 512  }
  0x34   : > { %1367 = vsyncadd (%p1493_p1), [#allocation11], 4294966784  ;;  %v381_v0 = vld [vmem:[#allocation9 + $0x18] sm:$0xff]  ;;  %v380_v1 = vld [vmem:[#allocation9 + $0x10] sm:$0xff]  ;;  %vm386_vm0 = vcmask 261120   ;;  %vm410_vm1 = vcmask 785408  }
  0x35   : > { %402 = vmatpush.msra.mxu0 %v381_v0  ;;  %v375_v2 = vld [vmem:[%s319_s8] sm:$0xff]  ;;  %v376_v3 = vld [vmem:[#allocation7] sm:$0xff]  ;;  %v378_v5 = vld [vmem:[#allocation9] sm:$0xff]  ;;  %s1405_s9 = smov 72   ;;  %s1406_s11 = smov 120   ;;  %vm419_vm2 = vcmask 64512  }
  0x36   : > { %v379_v4 = vld [vmem:[#allocation9 + $0x8] sm:$0xff]  ;;  %v377_v6 = vadd.f32 %v376_v3, %v375_v2  ;;  %v1138_v7 = vld [vmem:[%s1743_s3] ss:$0 sm:$0xff]  ;;  %s1407_s16 = smov 96   ;;  %s1408_s23 = smov 112  }
  0x37   : > { %403 = vmatpush.msra.mxu0 %v380_v1  ;;  %s1409_s1 = smov 80   ;;  %s1410_s13 = smov 88  }
  0x38   : > { %s1411_s14 = smov 104   ;;  %s1412_s17 = smov 56  }
  0x39   : > { %404 = vmatpush.msra.mxu0 %v379_v4  ;;  %s1413_s19 = smov 40   ;;  %s1414_s20 = smov 64  }
  0x3a   : > { %s1415_s30 = smov 48   ;;  %s1646_s8 = scalar_lea.vmem [#allocation13], %s1579_s22 }
  0x3b   : > { %405 = vmatpush.msra.mxu0 %v378_v5  ;;  %s1416_s2 = smov 8   ;;  %s1417_s4 = smov 24  }
  0x3c   : > { %1004 = vmatmul.msk.f32.vlgmr.msra.gmra.mxu0 %vm386_vm0, %v377_v6 }
  0xb9   : > { %v407_v8 = vpop.f32.mrf.mxu0 }
  0xba   : > { %v408_v9 = vadd.f32 %v1138_v7, %v407_v8 }
  0xbc   : > { %411 = vst.msk [vmem:[#allocation2] sm:$0xff] %vm410_vm1, %v408_v9 }
  0xc3   : > { %v1599_v10 = vld [vmem:[#allocation2] sm:$0xff] }
  0xc4   : > { %675 = vrot.lane.b32.xlu2 %v1599_v10, %s1405_s9  ;;  %500 = vrot.lane.b32.xlu1 %v1599_v10, %s1406_s11  ;;  %s1418_s9 = smov 16   ;;  %s1020_s11 = sshll.u32 %s1390_s27, 3 }
  0xc5   : > { %417 = vrot.lane.b32.xlu0 %v1599_v10, %s1407_s16 }
  0xcc   : > { %586 = vrot.lane.b32.xlu2 %v1599_v10, %s1408_s23  ;;  %589 = vrot.lane.b32.xlu1 %v1599_v10, %s1409_s1  ;;  %s839_s1 = scalar_lea.hbm %s1747_s7, %s1020_s11 }
  0xcd   : > { %503 = vrot.lane.b32.xlu0 %v1599_v10, %s1410_s13  ;;  %s841_s13 = sshll.u32 %s1646_s8, 4  ;;  %s842_s13 = int_to_ptr.vmem [resolvable:$true] %s841_s13 }
  0xd5   : > { %672 = vrot.lane.b32.xlu0 %v1599_v10, %s1411_s14  ;;  %s843_s14 = sshll.u32 %s839_s1, 4  ;;  %s844_s14 = int_to_ptr.hbm [resolvable:$true] %s843_s14 }
 0x11e   : > { %v676_v11 = vpop.permute.xlu2 %675 }
 0x11f   : > { %1014 = vmatpush.xpose.msk.msrb.mxu0 %vm419_vm2, %v676_v11 }
 0x126   : > { %v587_v16 = vpop.permute.xlu2 %586 }
 0x136   : > { %v501_v12 = vpop.permute.xlu1 %500 }
 0x137   : > { %v418_v13 = vpop.permute.xlu0 %417 }
 0x138   : > { %1005 = vmatpush.xpose.msk.msra.mxu1 %vm419_vm2, %v418_v13 }
 0x13b   : > { %1006 = vmatmul.msk.f32.vlgmr.msra.gmra.mxu1 %vm419_vm2, %v1599_v10 }
 0x13e   : > { %v590_v14 = vpop.permute.xlu1 %589 }
 0x13f   : > { %v504_v15 = vpop.permute.xlu0 %503  ;;  %1011 = vmatpush.xpose.msk.msrb.mxu1 %vm419_vm2, %v590_v14 }
 0x140   : > { %1008 = vmatpush.xpose.msk.msra.mxu3 %vm419_vm2, %v504_v15 }
 0x143   : > { %1009 = vmatmul.msk.f32.vlgmr.msra.gmra.mxu3 %vm419_vm2, %v501_v12  ;;  %1012 = vmatmul.msk.f32.vlgmr.msrb.gmra.mxu1 %vm419_vm2, %v587_v16 }
 0x147   : > { %v673_v17 = vpop.permute.xlu0 %672 }
 0x148   : > { %1015 = vmatmul.msk.f32.vlgmr.msrb.gmra.mxu0 %vm419_vm2, %v673_v17 }
 0x1b8   : > { %v442_v18 = vpop.f32.mrf.mxu1 }
 0x1b9   : > { %v445_v19 = vsel %vm419_vm2, %v442_v18, -inf }
 0x1ba   : > { %446 = vmax.xlane.f32.xlu1 %v445_v19 }
 0x1c0   : > { %v612_v20 = vpop.f32.mrf.mxu1 }
 0x1c1   : > { %v615_v21 = vsel %vm419_vm2, %v612_v20, -inf }
 0x1c2   : > { %616 = vmax.xlane.f32.xlu0 %v615_v21 }
 0x1c5   : > { %v698_v24 = vpop.f32.mrf.mxu0 }
 0x1c6   : > { %v526_v22 = vpop.f32.mrf.mxu3  ;;  %v701_v25 = vsel %vm419_vm2, %v698_v24, -inf }
 0x1c7   : > { %v529_v23 = vsel %vm419_vm2, %v526_v22, -inf }
 0x1c8   : > { %530 = vmax.xlane.f32.xlu2 %v529_v23 }
 0x1d0   : > { %702 = vmax.xlane.f32.xlu2 %v701_v25 }
 0x1d6   : > { %557 = vrot.lane.b32.xlu0 %v1599_v10, %s1412_s17  ;;  %s813_s17 = scalar_lea.sflag [#allocation14], %s1576_s15 }
 0x22d   : > { %v447_v26 = vpop.xlane.xlu1 %446 }
 0x22e   : > { %v448_v27 = vsub.f32 %v442_v18, %v447_v26 }
 0x230   : > { %v449_v28 = vmul.f32 1.442695, %v448_v27 }
 0x232   : > { %1140 = vpow2.f32 %v449_v28 }
 0x235   : > { %v617_v29 = vpop.xlane.xlu0 %616 }
 0x236   : > { %v618_v30 = vsub.f32 %v612_v20, %v617_v29 }
 0x238   : > { %v1141_v31 = vpop.eup %1140  ;;  %v619_v32 = vmul.f32 1.442695, %v618_v30 }
 0x239   : > { %v451_v33 = vsel %vm419_vm2, %v1141_v31, 0.0 }
 0x23a   : > { %1142 = vpow2.f32 %v619_v32  ;;  %452 = vadd.xlane.f32.xlu1 %v451_v33 }
 0x23b   : > { %v531_v34 = vpop.xlane.xlu2 %530 }
 0x23c   : > { %v532_v35 = vsub.f32 %v526_v22, %v531_v34 }
 0x23e   : > { %v533_v36 = vmul.f32 1.442695, %v532_v35 }
 0x240   : > { %v1623_v37 = vpop.eup %1142  ;;  %1144 = vpow2.f32 %v533_v36 }
 0x241   : > { %v621_v38 = vsel %vm419_vm2, %v1623_v37, 0.0 }
 0x242   : > { %622 = vadd.xlane.f32.xlu0 %v621_v38 }
 0x243   : > { %v703_v39 = vpop.xlane.xlu2 %702 }
 0x244   : > { %v704_v40 = vsub.f32 %v698_v24, %v703_v39 }
 0x246   : > { %v1627_v41 = vpop.eup %1144  ;;  %v705_v42 = vmul.f32 1.442695, %v704_v40 }
 0x247   : > { %v535_v43 = vsel %vm419_vm2, %v1627_v41, 0.0 }
 0x248   : > { %1146 = vpow2.f32 %v705_v42  ;;  %536 = vadd.xlane.f32.xlu2 %v535_v43  ;;  %v558_v46 = vpop.permute.xlu0 %557 }
 0x24e   : > { %v1631_v44 = vpop.eup %1146 }
 0x24f   : > { %v707_v45 = vsel %vm419_vm2, %v1631_v44, 0.0 }
 0x250   : > { %708 = vadd.xlane.f32.xlu1 %v707_v45 }
 0x256   : > { %729 = vrot.lane.b32.xlu0 %v1599_v10, %s1413_s19  ;;  %s1290_s19 = sshra.s32 %s844_s14, 4  ;;  %s1291_s19 = int_to_ptr.hbm [resolvable:$true] %s1290_s19 }
 0x257   : > { %p1297_p11 = scmp.lt.s32.totalorder %s1291_s19, %s1747_s7 }
 0x260   : > { %471 = vrot.lane.b32.xlu2 %v1599_v10, %s1414_s20  ;;  %s1292_s20 = scalar_lea.hbm %s1291_s19, 8 }
 0x261   : > { %p1293_p1 = scmp.ne.s32.totalorder %s1291_s19, %s1292_s20 }
 0x263   : > { %p1294_p4 = pnand %p1293_p1, %p1548_p3 }
 0x265   : > { %p1295_p8 = pneg %p1294_p4 }
 0x269   : > { %643 = vrot.lane.b32.xlu1 %v1599_v10, %s1415_s30 }
 0x2ad   : > { %v453_v47 = vpop.xlane.xlu1 %452 }
 0x2ae   : > { %1148 = vrcp.f32 %v453_v47  ;;  %v465_v52 = vand.u32 2147483648, %v453_v47  ;;  %v463_v54 = vand.u32 2147483647, %v453_v47  ;;  %vm459_vm4 = vweird.f32 %v453_v47 }
 0x2b0   : > { %v466_v58 = vor.u32 1.1754944e-38, %v465_v52  ;;  %vm464_vm6 = vcmp.eq.f32.partialorder %v463_v54, 8.507059e+37  ;;  %v775_v52 = vld [vmem:[#allocation10] sm:$0xff] }
 0x2b4   : > { %v1149_v48 = vpop.eup %1148 }
 0x2b5   : > { %v455_v49 = vmul.f32 %v1149_v48, %v453_v47  ;;  %v1638_v50 = vpop.xlane.xlu0 %622  ;;  %vm460_vm3 = vweird.f32 %v1149_v48 }
 0x2b6   : > { %1150 = vrcp.f32 %v1638_v50  ;;  %vm461_vm5 = vmor %vm459_vm4, %vm460_vm3  ;;  %v635_v17 = vand.u32 2147483648, %v1638_v50  ;;  %vm629_vm12 = vweird.f32 %v1638_v50  ;;  %v633_v19 = vand.u32 2147483647, %v1638_v50 }
 0x2b7   : > { %v456_v51 = vsub.f32 1.0, %v455_v49  ;;  %v778_v49 = vld [vmem:[#allocation10 + $0x18] sm:$0xff] }
 0x2b8   : > { %v636_v28 = vor.u32 1.1754944e-38, %v635_v17  ;;  %vm634_vm15 = vcmp.eq.f32.partialorder %v633_v19, 8.507059e+37  ;;  %798 = vmatpush.msra.mxu1 %v778_v49 }
 0x2b9   : > { %v457_v53 = vmul.f32 %v1149_v48, %v456_v51  ;;  %v776_v51 = vld [vmem:[#allocation10 + $0x8] sm:$0xff] }
 0x2bb   : > { %v537_v55 = vpop.xlane.xlu2 %536  ;;  %v458_v56 = vadd.f32 %v1149_v48, %v457_v53 }
 0x2bc   : > { %v1641_v57 = vpop.eup %1150  ;;  %1152 = vrcp.f32 %v537_v55  ;;  %v549_v6 = vand.u32 2147483648, %v537_v55  ;;  %v547_v9 = vand.u32 2147483647, %v537_v55  ;;  %vm543_vm8 = vweird.f32 %v537_v55 }
 0x2bd   : > { %v462_v59 = vsel %vm461_vm5, %v1149_v48, %v458_v56  ;;  %v625_v61 = vmul.f32 %v1641_v57, %v1638_v50  ;;  %vm630_vm9 = vweird.f32 %v1641_v57  ;;  %v777_v50 = vld [vmem:[#allocation10 + $0x10] sm:$0xff]  ;;  %vm768_vm5 = vcmask 130048  }
 0x2be   : > { %v467_v60 = vsel %vm464_vm6, %v466_v58, %v462_v59  ;;  %v550_v13 = vor.u32 1.1754944e-38, %v549_v6  ;;  %vm548_vm11 = vcmp.eq.f32.partialorder %v547_v9, 8.507059e+37  ;;  %vm1658_vm13 = vmor %vm629_vm12, %vm630_vm9  ;;  %799 = vmatpush.msra.mxu1 %v777_v50  ;;  %vm770_vm6 = vcmask 195584  }
 0x2bf   : > { %v468_v62 = vmul.f32 %v1141_v31, %v467_v60  ;;  %v626_v1 = vsub.f32 1.0, %v625_v61 }
 0x2c0   : > { %800 = vmatpush.msra.mxu1 %v776_v51 }
 0x2c1   : > { %v469_v63 = vmul.f32 0.25, %v468_v62  ;;  %v627_v7 = vmul.f32 %v1641_v57, %v626_v1 }
 0x2c2   : > { %v1153_v0 = vpop.eup %1152  ;;  %801 = vmatpush.msra.mxu1 %v775_v52 }
 0x2c3   : > { %v539_v2 = vmul.f32 %v1153_v0, %v537_v55  ;;  %v472_v3 = vpop.permute.xlu2 %471  ;;  %v709_v4 = vpop.xlane.xlu1 %708  ;;  %470 = vst.msk [vmem:[%s1646_s8] sm:$0xff] %vm419_vm2, %v469_v63  ;;  %vm544_vm7 = vweird.f32 %v1153_v0  ;;  %v628_v14 = vadd.f32 %v1641_v57, %v627_v7 }
 0x2c4   : > { %1154 = vrcp.f32 %v709_v4  ;;  %492 = vmatpush.msra.mxu2 %v472_v3  ;;  %vm545_vm10 = vmor %vm543_vm8, %vm544_vm7  ;;  %v719_v23 = vand.u32 2147483647, %v709_v4  ;;  %v721_v24 = vand.u32 2147483648, %v709_v4  ;;  %vm715_vm1 = vweird.f32 %v709_v4 }
 0x2c5   : > { %v540_v5 = vsub.f32 1.0, %v539_v2  ;;  %1007 = vmatmul.msk.f32.vlgmr.msra.gmra.mxu2 %vm419_vm2, %v468_v62  ;;  %v632_v27 = vsel %vm1658_vm13, %v1641_v57, %v628_v14 }
 0x2c6   : > { %578 = vmatpush.msrb.mxu2 %v558_v46  ;;  %v722_v32 = vor.u32 1.1754944e-38, %v721_v24  ;;  %v637_v33 = vsel %vm634_vm15, %v636_v28, %v632_v27  ;;  %vm720_vm4 = vcmp.eq.f32.partialorder %v719_v23, 8.507059e+37 }
 0x2c7   : > { %v541_v8 = vmul.f32 %v1153_v0, %v540_v5  ;;  %v638_v38 = vmul.f32 %v1623_v37, %v637_v33 }
 0x2c8   : > { %v730_v10 = vpop.permute.xlu0 %729 }
 0x2c9   : > { %v542_v11 = vadd.f32 %v1153_v0, %v541_v8  ;;  %750 = vmatpush.msra.mxu2 %v730_v10  ;;  %v640_v39 = vmul.f32 0.25, %v638_v38 }
 0x2ca   : > { %v1155_v12 = vpop.eup %1154  ;;  %v553_v29 = vld [vmem:[%s1646_s8] sm:$0xff] }
 0x2cb   : > { %v711_v15 = vmul.f32 %v1155_v12, %v709_v4  ;;  %v546_v16 = vsel %vm545_vm10, %v1153_v0, %v542_v11  ;;  %vm716_vm14 = vweird.f32 %v1155_v12 }
 0x2cc   : > { %v551_v18 = vsel %vm548_vm11, %v550_v13, %v546_v16  ;;  %vm717_vm3 = vmor %vm715_vm1, %vm716_vm14 }
 0x2cd   : > { %v712_v20 = vsub.f32 1.0, %v711_v15  ;;  %v552_v21 = vmul.f32 %v1627_v41, %v551_v18 }
 0x2cf   : > { %v713_v25 = vmul.f32 %v1155_v12, %v712_v20  ;;  %v554_v26 = vmul.f32 0.25, %v552_v21  ;;  %1010 = vmatmul.msk.f32.vlgmr.msrb.gmra.mxu2 %vm419_vm2, %v552_v21 }
 0x2d1   : > { %v714_v30 = vadd.f32 %v1155_v12, %v713_v25  ;;  %v555_v31 = vadd.f32 %v554_v26, %v553_v29 }
 0x2d3   : > { %v718_v34 = vsel %vm717_vm3, %v1155_v12, %v714_v30  ;;  %556 = vst.msk [vmem:[%s1646_s8] sm:$0xff] %vm419_vm2, %v555_v31 }
 0x2d4   : > { %v723_v35 = vsel %vm720_vm4, %v722_v32, %v718_v34 }
 0x2d5   : > { %v724_v36 = vmul.f32 %v1631_v44, %v723_v35 }
 0x2d7   : > { %1016 = vmatmul.msk.f32.vlgmr.msra.gmra.mxu2 %vm419_vm2, %v724_v36  ;;  %v726_v43 = vmul.f32 0.25, %v724_v36 }
 0x2da   : > { %v639_v40 = vld [vmem:[%s1646_s8] sm:$0xff] }
 0x2db   : > { %v644_v41 = vpop.permute.xlu1 %643  ;;  %v641_v42 = vadd.f32 %v640_v39, %v639_v40 }
 0x2dc   : > { %664 = vmatpush.msrb.mxu3 %v644_v41 }
 0x2dd   : > { %1013 = vmatmul.msk.f32.vlgmr.msrb.gmra.mxu3 %vm419_vm2, %v638_v38  ;;  %642 = vst.msk [vmem:[%s1646_s8] sm:$0xff] %vm419_vm2, %v641_v42 }
 0x2e4   : > { %v725_v45 = vld [vmem:[%s1646_s8] sm:$0xff] }
 0x2e5   : > { %v727_v46 = vadd.f32 %v726_v43, %v725_v45 }
 0x2e7   : > { %728 = vst.msk [vmem:[%s1646_s8] sm:$0xff] %vm419_vm2, %v727_v46 }
 0x348   : > { %v494_v47 = vpop.f32.mrf.mxu2 }
 0x352   : > { %v580_v44 = vpop.f32.mrf.mxu2 }
 0x353   : > { %756 = vrot.lane.b32.xlu2 %v580_v44, %s1416_s2  ;;  %s1296_s2 = scalar_lea.hbm %s1747_s7, 16 }
 0x354   : > { %p1298_p12 = scmp.lt.s32.totalorder %s1296_s2, %s1292_s20 }
 0x356   : > { %p1299_p13 = por %p1298_p12, %p1297_p11 }
 0x358   : > { %p1300_p0 = pnand %p1299_p13, %p1295_p8 }
 0x35a   : > { %v752_v37 = vpop.f32.mrf.mxu2 }
 0x35b   : > { %764 = vrot.lane.b32.xlu0 %v752_v37, %s1417_s4 }
 0x360   : > { %v666_v48 = vpop.f32.mrf.mxu3 }
 0x361   : > { %760 = vrot.lane.b32.xlu1 %v666_v48, %s1418_s9 }
 0x3ad   : > { %v757_v53 = vpop.permute.xlu2 %756 }
 0x3ae   : > { %v767_v54 = vsel %vm419_vm2, %v494_v47, %v757_v53 }
 0x3cd   : > { %v765_v56 = vpop.permute.xlu0 %764 }
 0x3d3   : > { %v761_v55 = vpop.permute.xlu1 %760 }
 0x3d4   : > { %v769_v57 = vsel %vm768_vm5, %v767_v54, %v761_v55 }
 0x3d5   : > { %v771_v58 = vsel %vm770_vm6, %v769_v57, %v765_v56 }
 0x3d6   : > { %773 = vst.msk [vmem:[#allocation3] sm:$0xff] %vm386_vm0, %v771_v58 }
 0x3dd   : > { %v774_v59 = vld [vmem:[#allocation3] sm:$0xff] }
 0x3de   : > { %1017 = vmatmul.msk.f32.vlgmr.msra.gmra.mxu1 %vm386_vm0, %v774_v59 }
 0x3df   : > { %1303 = shalt.err (!%p1300_p0)
}
 0x3e0   : > { %1039 = dma.vmem_to_hbm [thread:$0]  (%p1548_p3), %s842_s13, 128, %s844_s14, %s813_s17   ;;  %v1139_v60 = vld [vmem:[%s1745_s5] ss:$0 sm:$0xff] }
 0x3e1   : > { %s824_s23 = scalar_lea.hbm %s1746_s6, %s1020_s11  ;;  %s363_s30 = scalar_lea.vmem [#allocation12], %s1579_s22 }
 0x3e2   : > { %s826_s19 = sshll.u32 %s363_s30, 4  ;;  %s828_s20 = sshll.u32 %s824_s23, 4  ;;  %s827_s19 = int_to_ptr.vmem [resolvable:$true] %s826_s19  ;;  %s829_s20 = int_to_ptr.hbm [resolvable:$true] %s828_s20 }
 0x3e3   : > { %s808_s2 = scalar_lea.sflag [#allocation6], %s1576_s15  ;;  %s1318_s13 = sshra.s32 %s829_s20, 4  ;;  %s1319_s13 = int_to_ptr.hbm [resolvable:$true] %s1318_s13 }
 0x3e4   : > { %s1320_s14 = scalar_lea.hbm %s1319_s13, 8  ;;  %s1324_s22 = scalar_lea.hbm %s1746_s6, 16 }
 0x3e5   : > { %p1321_p5 = scmp.ne.s32.totalorder %s1319_s13, %s1320_s14  ;;  %p1325_p2 = scmp.lt.s32.totalorder %s1319_s13, %s1746_s6 }
 0x3e6   : > { %p1326_p1 = scmp.lt.s32.totalorder %s1324_s22, %s1320_s14 }
 0x3e7   : > { %p1322_p7 = pnand %p1321_p5, %p1548_p3 }
 0x3e8   : > { %p1327_p4 = por %p1326_p1, %p1325_p2 }
 0x3e9   : > { %p1323_p10 = pneg %p1322_p7 }
 0x3eb   : > { %p1328_p8 = pnand %p1327_p4, %p1323_p10 }
 0x45b   : > { %v803_v61 = vpop.f32.mrf.mxu1 }
 0x45c   : > { %v804_v62 = vadd.f32 %v1139_v60, %v803_v61 }
 0x45e   : > { %806 = vst.msk [vmem:[%s363_s30] sm:$0xff] %vm386_vm0, %v804_v62 }
 0x45f   : > { %1331 = shalt.err (!%p1328_p8)
}
 0x460   : > { %1038 = dma.vmem_to_hbm [thread:$0]  (%p1548_p3), %s827_s19, 128, %s829_s20, %s808_s2  }
 0x461 PF: > { %s855_s15 = sand.u32 1, %s1378_s24   ;;  %p1057_p11 = pnand %p994_p9, %p1508_p6 }
 0x462   : > { %s856_s8 = scalar_lea.sflag [#allocation6], %s855_s15 }
 0x463   : > { %p1058_p12 = pneg %p1057_p11 }
 0x465   : > { %1369 = dma.done.wait (%p1058_p12), %s856_s8, 128  }
 0x466   : > { %1371 = vsyncadd (%p1058_p12), %s856_s8, 4294967168  ;;  %s866_s16 = scalar_lea.sflag [#allocation14], %s855_s15 }
 0x467   : > { %1373 = dma.done.wait (%p1058_p12), %s866_s16, 128  }
 0x468   : > { %1375 = vsyncadd (%p1058_p12), %s866_s16, 4294967168  ;;  %s29_s29 = sadd.s32 1, %s1398_s29   ;;  %s1764_s24 = smov %s1382_s25 }
 0x469   : > { %p26_p13 = scmp.ge.s32.totalorder %s29_s29, 4   ;;  %s1765_s25 = smov %s1386_s26 }
 0x46a   : > { %s1766_s26 = smov %s1564_s10  ;;  %s1767_s27 = smov %s1394_s28 }
 0x46b   : > { %s1768_s28 = smov %s1770_s18  ;;  %28 = sbr.rel (!%p26_p13) target bundleno = 14 (0xe), region = 123 }
 0x470   :  { %872 = vsyncpa [#allocation5], 1 }
 0x471   :  { %874 = vsyncpa [#allocation5 + $0x1], 1 }
 0x472   :  { %875 = vsyncpa [#allocation8], 1 }
 0x473   :  { %876 = vsyncpa [#allocation11], 1 }
 0x474   :  { %877 = vsyncpa [#allocation6], 1 }
 0x475   :  { %879 = vsyncpa [#allocation6 + $0x1], 1 }
 0x476   :  { %880 = vsyncpa [#allocation14], 1 }
 0x477   :  { %882 = vsyncpa [#allocation14 + $0x1], 1 }

</bundles_post_ra>
